<compile_context>
chip_gen: v7x
topology: tpu7x:2x2x1
jax: 0.10.0
libtpu: 0.0.40
codegen_flags: <defaults>
</compile_context>

<pallas_src>
import functools
import math

import jax
import jax.numpy as jnp
from jax.experimental import pallas as pl
from jax.experimental.pallas import tpu as pltpu


# --------------------------- budgets / helpers -----------------------------

def _physical_vmem_bytes():
    try:
        info = pltpu.get_tpu_info()
        cap = getattr(info, "vmem_capacity_bytes", None)
        if cap:
            return int(cap)
    except Exception:
        pass
    return 64 * 1024 * 1024            # conservative fallback (v7x per-TC)


_PHYS_VMEM = _physical_vmem_bytes()
# Scoped-VMEM request: half of physical, capped at 64 MiB.
#   v5e/v6e (128 MiB) -> 64 MiB ; v7x (64 MiB) -> 32 MiB.
_VMEM_LIMIT = min(_PHYS_VMEM // 2, 64 * 1024 * 1024)
# Working-set budget per pallas_call (double-buffered blocks + f32 temps).
_BLOCK_BUDGET = int(_VMEM_LIMIT * 0.6)


def _cparams(*semantics):
    kw = dict(vmem_limit_bytes=_VMEM_LIMIT)
    if semantics:
        kw["dimension_semantics"] = tuple(semantics)
    return pltpu.CompilerParams(**kw)


def _cost(bytes_accessed, elems):
    # All kernels here are HBM-bandwidth bound; flops is a rough per-element count.
    return pl.CostEstimate(flops=8 * int(elems), transcendentals=0,
                           bytes_accessed=int(bytes_accessed))


def _sublane(dtype):
    """Sublane packing unit: 8 rows for 32-bit, 16 for bf16, 32 for int8/fp8."""
    return max(8, 32 // jnp.dtype(dtype).itemsize)


def _row_cost_bytes(k, itemsize):
    """Per-row VMEM footprint: double-buffered in + out blocks + f32 temporaries."""
    return k * (4 * itemsize + 3 * 4)


def _pick_rows(rows, k, itemsize, sub):
    """Largest sublane-multiple row block whose working set fits the budget."""
    per_row = max(_row_cost_bytes(k, itemsize), 1)
    br = (_BLOCK_BUDGET // per_row) // sub * sub
    br = max(br, sub)
    return rows if br >= rows else br


def _pick_lanes(k, rows, itemsize):
    """Largest multiple-of-128 lane block whose working set fits the budget."""
    per_lane = max(rows * (4 * itemsize + 3 * 4), 1)
    bk = (_BLOCK_BUDGET // per_lane) // 128 * 128
    bk = max(bk, 128)
    return k if bk >= k else bk


def _fits_single_pass(k, itemsize, sub):
    return sub * _row_cost_bytes(k, itemsize) <= _BLOCK_BUDGET


# ----------------------------- Pallas kernels ------------------------------

def _rowwise_norm_kernel(x_ref, g_ref, b_ref, o_ref, *, eps):
    """Normalize over every axis of the block except axis 0, then affine.

      'in'   : x (br, hw)       g/b (br, 1)
      'gn'   : x (bg, cg, hw)   g/b (bg, cg, 1)
      'layer': x (br, k)        g/b (1, k)
    """
    x = x_ref[...].astype(jnp.float32)
    axes = tuple(range(1, x.ndim))
    mean = jnp.mean(x, axis=axes, keepdims=True)
    xc = x - mean
    var = jnp.mean(xc * xc, axis=axes, keepdims=True)      # biased, like PyTorch
    inv = jax.lax.rsqrt(var + eps)
    g = g_ref[...].astype(jnp.float32)
    b = b_ref[...].astype(jnp.float32)
    o_ref[...] = (xc * (inv * g) + b).astype(o_ref.dtype)


def _row_stats_kernel(x_ref, m0_ref, s1_ref, s2_ref, *, k_total, bk):
    """Per-row shifted sum / sum-of-squares, accumulated over the lane grid axis."""
    j = pl.program_id(1)
    x = x_ref[...].astype(jnp.float32)                      # (br, bk)

    @pl.when(j == 0)
    def _():
        m0_ref[...] = x[:, 0:1]                             # per-row shift
        s1_ref[...] = jnp.zeros_like(s1_ref)
        s2_ref[...] = jnp.zeros_like(s2_ref)

    col = jax.lax.broadcasted_iota(jnp.int32, x.shape, 1) + j * bk
    xc = jnp.where(col < k_total, x - m0_ref[...], 0.0)     # mask partial K block
    s1_ref[...] += jnp.sum(xc, axis=-1, keepdims=True)
    s2_ref[...] += jnp.sum(xc * xc, axis=-1, keepdims=True)


def _row_scale_shift_kernel(x_ref, s_ref, b_ref, o_ref):
    """y = x * scale[row] + shift[row]."""
    x = x_ref[...].astype(jnp.float32)
    o_ref[...] = (x * s_ref[...] + b_ref[...]).astype(o_ref.dtype)


def _rowcol_apply_kernel(x_ref, m_ref, inv_ref, g_ref, b_ref, o_ref):
    """y = (x - mean[row]) * inv[row] * gamma[col] + beta[col]."""
    x = x_ref[...].astype(jnp.float32)
    o_ref[...] = ((x - m_ref[...]) * (inv_ref[...] * g_ref[...])
                  + b_ref[...]).astype(o_ref.dtype)


def _bn_fused_kernel(x_ref, g_ref, b_ref, o_ref, *, eps):
    """x fully resident in VMEM: per-channel stats over (N, HW) + normalize."""
    x = x_ref[...].astype(jnp.float32)                      # (n, c, hw)
    n, _, hw = x.shape
    cnt = jnp.float32(n * hw)
    s = jnp.sum(jnp.sum(x, axis=2, keepdims=True), axis=0, keepdims=True)
    mean = s / cnt                                          # (1, c, 1)
    xc = x - mean
    v = jnp.sum(jnp.sum(xc * xc, axis=2, keepdims=True), axis=0, keepdims=True)
    inv = jax.lax.rsqrt(v / cnt + eps)
    g = g_ref[...].astype(jnp.float32)                      # (c, 1)
    b = b_ref[...].astype(jnp.float32)
    o_ref[...] = (xc * (inv * g) + b).astype(o_ref.dtype)


def _pixel_norm_kernel(x_ref, o_ref, *, eps):
    """L2-normalize over the channel (sublane) axis; H*W stays lane-dense."""
    x = x_ref[...].astype(jnp.float32)                      # (c, thw)
    ss = jnp.sum(x * x, axis=0, keepdims=True)
    inv = jax.lax.rsqrt(jnp.maximum(ss, eps * eps))         # == 1/max(||x||, eps)
    o_ref[...] = (x * inv).astype(o_ref.dtype)


# --------------------------- generic two-pass core -------------------------

def _row_mean_var(x2):
    """Per-row (mean, biased var) of a 2-D view; reduction axis tiled in Pallas."""
    r, k = x2.shape
    itemsize = x2.dtype.itemsize
    sub = _sublane(x2.dtype)
    bk = _pick_lanes(k, sub, itemsize)
    br = _pick_rows(r, bk, itemsize, sub)
    # TODO(synk): if cdiv(r, br) == 1 (tiny N*C, huge HW/K) the only parallel
    # axis has a single program and v7x's second TensorCore idles; a K-split
    # with partial-stat combine would shard that degenerate case.
    m0, s1, s2 = pl.pallas_call(
        functools.partial(_row_stats_kernel, k_total=k, bk=bk),
        out_shape=(jax.ShapeDtypeStruct((r, 1), jnp.float32),) * 3,
        grid=(pl.cdiv(r, br), pl.cdiv(k, bk)),
        in_specs=[pl.BlockSpec((br, bk), lambda i, j: (i, j))],
        out_specs=(pl.BlockSpec((br, 1), lambda i, j: (i, 0)),) * 3,
        compiler_params=_cparams("parallel", "arbitrary"),
        cost_estimate=_cost(x2.size * itemsize + 3 * r * 4, x2.size),
    )(x2)
    cnt = jnp.float32(k)
    d = s1[:, 0] / cnt
    mean = m0[:, 0] + d
    var = jnp.maximum(s2[:, 0] / cnt - d * d, 0.0)          # shifted -> benign
    return mean, var


def _row_scale_shift(x2, scale, shift, out_dtype):
    """y = x * scale[row] + shift[row] on a 2-D view (both axes tiled)."""
    r, k = x2.shape
    itemsize = x2.dtype.itemsize
    sub = _sublane(x2.dtype)
    bk = _pick_lanes(k, sub, itemsize)
    br = _pick_rows(r, bk, itemsize, sub)
    return pl.pallas_call(
        _row_scale_shift_kernel,
        out_shape=jax.ShapeDtypeStruct((r, k), out_dtype),
        grid=(pl.cdiv(r, br), pl.cdiv(k, bk)),
        in_specs=[pl.BlockSpec((br, bk), lambda i, j: (i, j)),
                  pl.BlockSpec((br, 1), lambda i, j: (i, 0)),
                  pl.BlockSpec((br, 1), lambda i, j: (i, 0))],
        out_specs=pl.BlockSpec((br, bk), lambda i, j: (i, j)),
        compiler_params=_cparams("parallel", "parallel"),
        cost_estimate=_cost(2 * x2.size * itemsize, x2.size),
    )(x2, scale.reshape(r, 1).astype(jnp.float32),
      shift.reshape(r, 1).astype(jnp.float32))


# ----------------------------- branch wrappers ------------------------------

def _batch_norm(x, weight, bias, eps, force_two_pass=False):
    n, c, h, w = x.shape
    hw = h * w
    itemsize = x.dtype.itemsize
    x3 = x.reshape(n, c, hw)

    # Fast path: whole tensor (+ f32 temps) resident in VMEM -> one fused pass
    # (1 read + 1 write of x instead of 2 reads + 1 write), no cancellation.
    fused_bytes = x.size * (4 * itemsize + 3 * 4) + 8 * c * 4
    if (not force_two_pass) and fused_bytes <= _BLOCK_BUDGET:
        y3 = pl.pallas_call(
            functools.partial(_bn_fused_kernel, eps=float(eps)),
            out_shape=jax.ShapeDtypeStruct((n, c, hw), x.dtype),
            compiler_params=_cparams(),
            cost_estimate=_cost(2 * x.size * itemsize, x.size),
        )(x3, weight.reshape(c, 1), bias.reshape(c, 1))
        return y3.reshape(n, c, h, w)

    # General path: per-(n,c) shifted stats (rows = N*C, HW tiled arbitrary),
    # combined across N in tiny JAX glue, then a per-row scale/shift pass.
    x2 = x3.reshape(n * c, hw)
    mean_nc, var_nc = _row_mean_var(x2)
    mean_nc = mean_nc.reshape(n, c)
    var_nc = var_nc.reshape(n, c)
    mean_c = jnp.mean(mean_nc, axis=0)
    m2_c = jnp.sum(var_nc * hw + hw * (mean_nc - mean_c) ** 2, axis=0)
    var_c = jnp.maximum(m2_c / (n * hw), 0.0)

    scale_c = weight.astype(jnp.float32) * jax.lax.rsqrt(var_c + eps)
    shift_c = bias.astype(jnp.float32) - mean_c * scale_c
    y2 = _row_scale_shift(x2, jnp.tile(scale_c, n), jnp.tile(shift_c, n), x.dtype)
    return y2.reshape(n, c, h, w)


def _instance_norm(x, weight, bias, eps, force_two_pass=False):
    n, c, h, w = x.shape
    hw = h * w
    itemsize = x.dtype.itemsize
    sub = _sublane(x.dtype)
    x2 = x.reshape(n * c, hw)
    w_r = jnp.tile(weight.astype(jnp.float32), n)
    b_r = jnp.tile(bias.astype(jnp.float32), n)

    if (not force_two_pass) and _fits_single_pass(hw, itemsize, sub):
        br = _pick_rows(n * c, hw, itemsize, sub)
        y2 = pl.pallas_call(
            functools.partial(_rowwise_norm_kernel, eps=float(eps)),
            out_shape=jax.ShapeDtypeStruct((n * c, hw), x.dtype),
            grid=(pl.cdiv(n * c, br),),
            in_specs=[pl.BlockSpec((br, hw), lambda i: (i, 0)),
                      pl.BlockSpec((br, 1), lambda i: (i, 0)),
                      pl.BlockSpec((br, 1), lambda i: (i, 0))],
            out_specs=pl.BlockSpec((br, hw), lambda i: (i, 0)),
            compiler_params=_cparams("parallel"),
            cost_estimate=_cost(2 * x.size * itemsize, x.size),
        )(x2, w_r.reshape(n * c, 1), b_r.reshape(n * c, 1))
        return y2.reshape(n, c, h, w)

    # Large-HW fallback: stats with HW tiled, then per-row scale/shift.
    mean_r, var_r = _row_mean_var(x2)
    inv_r = jax.lax.rsqrt(var_r + eps)
    scale_r = w_r * inv_r
    shift_r = b_r - mean_r * scale_r
    y2 = _row_scale_shift(x2, scale_r, shift_r, x.dtype)
    return y2.reshape(n, c, h, w)


def _group_norm(x, weight, bias, num_groups, eps, force_two_pass=False):
    n, c, h, w = x.shape
    grp = num_groups
    cg = c // grp
    hw = h * w
    itemsize = x.dtype.itemsize
    sub = _sublane(x.dtype)

    # Single pass only when the trailing (cg, hw) tile is sublane-dense and a
    # full group fits the block budget.
    if ((not force_two_pass) and cg >= sub
            and _row_cost_bytes(cg * hw, itemsize) <= _BLOCK_BUDGET):
        x4 = x.reshape(n, grp, cg, hw)
        bg = max(1, min(grp, _BLOCK_BUDGET // _row_cost_bytes(cg * hw, itemsize)))
        y4 = pl.pallas_call(
            functools.partial(_rowwise_norm_kernel, eps=float(eps)),
            out_shape=jax.ShapeDtypeStruct((n, grp, cg, hw), x.dtype),
            grid=(n, pl.cdiv(grp, bg)),
            in_specs=[pl.BlockSpec((None, bg, cg, hw), lambda i, jg: (i, jg, 0, 0)),
                      pl.BlockSpec((bg, cg, 1), lambda i, jg: (jg, 0, 0)),
                      pl.BlockSpec((bg, cg, 1), lambda i, jg: (jg, 0, 0))],
            out_specs=pl.BlockSpec((None, bg, cg, hw), lambda i, jg: (i, jg, 0, 0)),
            compiler_params=_cparams("parallel", "parallel"),
            cost_estimate=_cost(2 * x.size * itemsize, x.size),
        )(x4, weight.reshape(grp, cg, 1), bias.reshape(grp, cg, 1))
        return y4.reshape(n, c, h, w)

    # Lane-dense path (fixes cg < 8 sublane underpacking, handles huge groups):
    # stats on the (N*G, cg*HW) view, then per-(n,c) scale/shift on (N*C, HW).
    xg = x.reshape(n * grp, cg * hw)
    mean_g, var_g = _row_mean_var(xg)
    inv_g = jax.lax.rsqrt(var_g + eps).reshape(n, grp, 1)
    mean_g = mean_g.reshape(n, grp, 1)
    w3 = weight.astype(jnp.float32).reshape(1, grp, cg)
    b3 = bias.astype(jnp.float32).reshape(1, grp, cg)
    scale_nc = (w3 * inv_g).reshape(n * c)
    shift_nc = (b3 - mean_g * w3 * inv_g).reshape(n * c)
    y2 = _row_scale_shift(x.reshape(n * c, hw), scale_nc, shift_nc, x.dtype)
    return y2.reshape(n, c, h, w)


def _layer_norm(x, weight, bias, normalize_shape, eps, force_two_pass=False):
    k = int(math.prod(normalize_shape))
    nlead = x.ndim - len(normalize_shape)
    r = int(math.prod(x.shape[:nlead])) if nlead > 0 else 1
    itemsize = x.dtype.itemsize
    sub = _sublane(x.dtype)
    x2 = x.reshape(r, k)

    if (not force_two_pass) and _fits_single_pass(k, itemsize, sub):
        br = _pick_rows(r, k, itemsize, sub)
        # TODO(synk): tiny r (1-2 rows) leaves one grid program so v7x's second
        # TensorCore idles; the two-pass path below shards over K instead.
        y2 = pl.pallas_call(
            functools.partial(_rowwise_norm_kernel, eps=float(eps)),
            out_shape=jax.ShapeDtypeStruct((r, k), x.dtype),
            grid=(pl.cdiv(r, br),),
            in_specs=[pl.BlockSpec((br, k), lambda i: (i, 0)),
                      pl.BlockSpec((1, k), lambda i: (0, 0)),
                      pl.BlockSpec((1, k), lambda i: (0, 0))],
            out_specs=pl.BlockSpec((br, k), lambda i: (i, 0)),
            compiler_params=_cparams("parallel"),
            cost_estimate=_cost(2 * x.size * itemsize, x.size),
        )(x2, weight.reshape(1, k), bias.reshape(1, k))
        return y2.reshape(x.shape)

    # Large-K fallback: shifted stats with K tiled, then
    # y = (x - mean[row]) * inv[row] * gamma[col] + beta[col].
    mean_r, var_r = _row_mean_var(x2)
    inv_r = jax.lax.rsqrt(var_r + eps)
    bk = _pick_lanes(k, sub, itemsize)
    br = _pick_rows(r, bk, itemsize, sub)
    y2 = pl.pallas_call(
        _rowcol_apply_kernel,
        out_shape=jax.ShapeDtypeStruct((r, k), x.dtype),
        grid=(pl.cdiv(r, br), pl.cdiv(k, bk)),
        in_specs=[pl.BlockSpec((br, bk), lambda i, j: (i, j)),
                  pl.BlockSpec((br, 1), lambda i, j: (i, 0)),
                  pl.BlockSpec((br, 1), lambda i, j: (i, 0)),
                  pl.BlockSpec((1, bk), lambda i, j: (0, j)),
                  pl.BlockSpec((1, bk), lambda i, j: (0, j))],
        out_specs=pl.BlockSpec((br, bk), lambda i, j: (i, j)),
        compiler_params=_cparams("parallel", "parallel"),
        cost_estimate=_cost(2 * x.size * itemsize, x.size),
    )(x2, mean_r.reshape(r, 1), inv_r.reshape(r, 1),
      weight.astype(jnp.float32).reshape(1, k),
      bias.astype(jnp.float32).reshape(1, k))
    return y2.reshape(x.shape)


def _pixel_norm(x, eps=1e-12):
    n, c, h, w = x.shape
    hw = h * w
    itemsize = x.dtype.itemsize
    x3 = x.reshape(n, c, hw)
    thw = _pick_lanes(hw, c, itemsize)
    # TODO(synk): when hw < 128 the output lane extent is below a full vreg row
    # (masked stores); packing multiple images per block would need a layout
    # transpose, so small-hw inputs simply eat that cost.
    y3 = pl.pallas_call(
        functools.partial(_pixel_norm_kernel, eps=float(eps)),
        out_shape=jax.ShapeDtypeStruct((n, c, hw), x.dtype),
        grid=(n, pl.cdiv(hw, thw)),
        in_specs=[pl.BlockSpec((None, c, thw), lambda i, j: (i, 0, j))],
        out_specs=pl.BlockSpec((None, c, thw), lambda i, j: (i, 0, j)),
        compiler_params=_cparams("parallel", "parallel"),
        cost_estimate=_cost(2 * x.size * itemsize, x.size),
    )(x3)
    return y3.reshape(n, c, h, w)


# ------------------------------- NormLayer ---------------------------------

class NormLayer:
    """JAX/Pallas port of SARN's NormLayer (forward pass only)."""

    def __init__(self, channels, normalize_shape=None, norm_type='bn'):
        norm_type = norm_type.lower()
        self.norm_type = norm_type
        self.channels = channels
        self.eps = 1e-5
        if norm_type in ('bn', 'in'):
            self.weight = jnp.ones((channels,), jnp.float32)   # PyTorch default init
            self.bias = jnp.zeros((channels,), jnp.float32)
        elif norm_type == 'gn':
            assert channels % 32 == 0, 'GroupNorm(32, C) needs C % 32 == 0'
            self.num_groups = 32
            self.weight = jnp.ones((channels,), jnp.float32)
            self.bias = jnp.zeros((channels,), jnp.float32)
        elif norm_type == 'layer':
            shape = ((normalize_shape,) if isinstance(normalize_shape, int)
                     else tuple(normalize_shape))
            self.normalize_shape = shape
            self.weight = jnp.ones(shape, jnp.float32)
            self.bias = jnp.zeros(shape, jnp.float32)
        elif norm_type in ('pixel', 'none'):
            pass
        else:
            assert 1 == 0, 'Norm type {} not support.'.format(norm_type)

    def __call__(self, x):
        nt = self.norm_type
        if nt == 'none':
            return x
        if nt == 'bn':
            # TODO(synk): running_mean/running_var buffer updates are not materialized.
            return _batch_norm(x, self.weight, self.bias, self.eps)
        if nt == 'in':
            return _instance_norm(x, self.weight, self.bias, self.eps)
        if nt == 'gn':
            return _group_norm(x, self.weight, self.bias, self.num_groups, self.eps)
        if nt == 'pixel':
            return _pixel_norm(x)
        if nt == 'layer':
            return _layer_norm(x, self.weight, self.bias, self.normalize_shape, self.eps)
        raise AssertionError(f'Norm type {nt} not support.')


# --------------------------------- main ------------------------------------

if __name__ == "__main__":
    key = jax.random.PRNGKey(0)
    k0, k1, k2 = jax.random.split(key, 3)
    x = jax.random.normal(k0, (2, 4, 16, 16), jnp.float32)

    # BatchNorm2d (train-mode statistics) -- fused fast path.
    bn = NormLayer(channels=4)
    y_bn = jax.block_until_ready(bn(x))
    mean = x.mean(axis=(0, 2, 3), keepdims=True)
    var = x.var(axis=(0, 2, 3), keepdims=True)
    ref_bn = (x - mean) / jnp.sqrt(var + 1e-5)
    assert jnp.allclose(y_bn, ref_bn, atol=1e-4), "bn (fused) mismatch"

    # BatchNorm2d -- forced two-pass (stats + scale/shift) path.
    y_bn2 = jax.block_until_ready(
        _batch_norm(x, bn.weight, bn.bias, bn.eps, force_two_pass=True))
    assert jnp.allclose(y_bn2, ref_bn, atol=1e-4), "bn (two-pass) mismatch"

    # InstanceNorm2d(affine=True) -- single-pass and forced two-pass.
    inn = NormLayer(channels=4, norm_type='in')
    y_in = jax.block_until_ready(inn(x))
    ref_in = (x - x.mean(axis=(2, 3), keepdims=True)) / jnp.sqrt(
        x.var(axis=(2, 3), keepdims=True) + 1e-5)
    assert jnp.allclose(y_in, ref_in, atol=1e-4), "in mismatch"
    y_in2 = jax.block_until_ready(
        _instance_norm(x, inn.weight, inn.bias, inn.eps, force_two_pass=True))
    assert jnp.allclose(y_in2, ref_in, atol=1e-4), "in (two-pass) mismatch"

    # GroupNorm(32, 64): cg = 2 < 8 -> lane-dense two-pass path.
    xg = jax.random.normal(k1, (2, 64, 8, 8), jnp.float32)
    gn = NormLayer(channels=64, norm_type='gn')
    y_gn = jax.block_until_ready(gn(xg))
    g5 = xg.reshape(2, 32, 2, 8, 8)
    gm = g5.mean(axis=(2, 3, 4), keepdims=True)
    gv = g5.var(axis=(2, 3, 4), keepdims=True)
    ref_gn = ((g5 - gm) / jnp.sqrt(gv + 1e-5)).reshape(2, 64, 8, 8)
    assert jnp.allclose(y_gn, ref_gn, atol=1e-4), "gn (cg<8) mismatch"

    # GroupNorm(32, 256): cg = 8 -> sublane-dense single-pass path.
    xg2 = jax.random.normal(k2, (2, 256, 4, 4), jnp.float32)
    gn2 = NormLayer(channels=256, norm_type='gn')
    y_gn2 = jax.block_until_ready(gn2(xg2))
    g5b = xg2.reshape(2, 32, 8, 4, 4)
    gm2 = g5b.mean(axis=(2, 3, 4), keepdims=True)
    gv2 = g5b.var(axis=(2, 3, 4), keepdims=True)
    ref_gn2 = ((g5b - gm2) / jnp.sqrt(gv2 + 1e-5)).reshape(2, 256, 4, 4)
    assert jnp.allclose(y_gn2, ref_gn2, atol=1e-4), "gn (cg>=8) mismatch"

    # Pixel norm (F.normalize over dim=1).
    px = NormLayer(channels=4, norm_type='pixel')
    y_px = jax.block_until_ready(px(x))
    nrm = jnp.sqrt(jnp.sum(x * x, axis=1, keepdims=True))
    ref_px = x / jnp.maximum(nrm, 1e-12)
    assert jnp.allclose(y_px, ref_px, atol=1e-4), "pixel mismatch"

    # LayerNorm over (C, H, W) -- single-pass and forced two-pass.
    ln = NormLayer(channels=4, normalize_shape=(4, 16, 16), norm_type='layer')
    y_ln = jax.block_until_ready(ln(x))
    m = x.mean(axis=(1, 2, 3), keepdims=True)
    v = x.var(axis=(1, 2, 3), keepdims=True)
    ref_ln = (x - m) / jnp.sqrt(v + 1e-5)
    assert jnp.allclose(y_ln, ref_ln, atol=1e-4), "layer mismatch"
    y_ln2 = jax.block_until_ready(
        _layer_norm(x, ln.weight, ln.bias, ln.normalize_shape, ln.eps,
                    force_two_pass=True))
    assert jnp.allclose(y_ln2, ref_ln, atol=1e-4), "layer (two-pass) mismatch"

    # Identity.
    ident = NormLayer(channels=4, norm_type='none')
    assert jnp.allclose(ident(x), x), "none mismatch"

    print("KERNEL_OK")
</pallas_src>

<mosaic_0001>
module attributes {stable_mosaic.version = 11 : i64} {
  func.func @_bn_fused_kernel(%arg0: memref<2x4x256xf32, #tpu.memory_space<vmem>>, %arg1: memref<4x1xf32, #tpu.memory_space<vmem>>, %arg2: memref<4x1xf32, #tpu.memory_space<vmem>>, %arg3: memref<2x4x256xf32, #tpu.memory_space<vmem>>) attributes {dimension_semantics = [], scalar_prefetch = 0 : i64, scratch_operands = 0 : i64, tpu.core_type = #tpu.core_type<tc>} {
    %c0 = arith.constant 0 : index
    %c0_0 = arith.constant 0 : index
    %c0_1 = arith.constant 0 : index
    %0 = vector.load %arg0[%c0, %c0_0, %c0_1] : memref<2x4x256xf32, #tpu.memory_space<vmem>>, vector<2x4x256xf32>
    %cst = arith.constant dense<0.000000e+00> : vector<2x4xf32>
    %1 = vector.multi_reduction <add>, %0, %cst [2] : vector<2x4x256xf32> to vector<2x4xf32>
    %2 = vector.shape_cast %1 : vector<2x4xf32> to vector<2x4x1xf32>
    %cst_2 = arith.constant dense<0.000000e+00> : vector<4x1xf32>
    %3 = vector.multi_reduction <add>, %2, %cst_2 [0] : vector<2x4x1xf32> to vector<4x1xf32>
    %4 = vector.shape_cast %3 : vector<4x1xf32> to vector<1x4x1xf32>
    %cst_3 = arith.constant 5.120000e+02 : f32
    %5 = vector.broadcast %cst_3 : f32 to vector<1x4x1xf32>
    %6 = arith.divf %4, %5 : vector<1x4x1xf32>
    %7 = vector.broadcast %6 : vector<1x4x1xf32> to vector<2x4x256xf32>
    %8 = arith.subf %0, %7 : vector<2x4x256xf32>
    %9 = arith.mulf %8, %8 : vector<2x4x256xf32>
    %cst_4 = arith.constant dense<0.000000e+00> : vector<2x4xf32>
    %10 = vector.multi_reduction <add>, %9, %cst_4 [2] : vector<2x4x256xf32> to vector<2x4xf32>
    %11 = vector.shape_cast %10 : vector<2x4xf32> to vector<2x4x1xf32>
    %cst_5 = arith.constant dense<0.000000e+00> : vector<4x1xf32>
    %12 = vector.multi_reduction <add>, %11, %cst_5 [0] : vector<2x4x1xf32> to vector<4x1xf32>
    %13 = vector.shape_cast %12 : vector<4x1xf32> to vector<1x4x1xf32>
    %cst_6 = arith.constant 5.120000e+02 : f32
    %14 = vector.broadcast %cst_6 : f32 to vector<1x4x1xf32>
    %15 = arith.divf %13, %14 : vector<1x4x1xf32>
    %cst_7 = arith.constant 9.99999974E-6 : f32
    %16 = vector.broadcast %cst_7 : f32 to vector<1x4x1xf32>
    %17 = arith.addf %15, %16 : vector<1x4x1xf32>
    %18 = math.rsqrt %17 : vector<1x4x1xf32>
    %c0_8 = arith.constant 0 : index
    %c0_9 = arith.constant 0 : index
    %19 = vector.load %arg1[%c0_8, %c0_9] : memref<4x1xf32, #tpu.memory_space<vmem>>, vector<4x1xf32>
    %c0_10 = arith.constant 0 : index
    %c0_11 = arith.constant 0 : index
    %20 = vector.load %arg2[%c0_10, %c0_11] : memref<4x1xf32, #tpu.memory_space<vmem>>, vector<4x1xf32>
    %21 = vector.shape_cast %19 : vector<4x1xf32> to vector<1x4x1xf32>
    %22 = arith.mulf %18, %21 : vector<1x4x1xf32>
    %23 = vector.broadcast %22 : vector<1x4x1xf32> to vector<2x4x256xf32>
    %24 = arith.mulf %8, %23 : vector<2x4x256xf32>
    %25 = vector.shape_cast %20 : vector<4x1xf32> to vector<1x4x1xf32>
    %26 = vector.broadcast %25 : vector<1x4x1xf32> to vector<2x4x256xf32>
    %27 = arith.addf %24, %26 : vector<2x4x256xf32>
    %c0_12 = arith.constant 0 : index
    %c0_13 = arith.constant 0 : index
    %c0_14 = arith.constant 0 : index
    %28 = vector.load %arg3[%c0_12, %c0_13, %c0_14] : memref<2x4x256xf32, #tpu.memory_space<vmem>>, vector<2x4x256xf32>
    tpu.vector_store %arg3[%c0_12, %c0_13, %c0_14], %27 {strides = array<i32>} : memref<2x4x256xf32, #tpu.memory_space<vmem>>, vector<2x4x256xf32>,
    return
  }
}

</mosaic_0001>

<bundles_post_ra>
// kernel: tpu_custom_call.1
= control target key start
LH: loop header
LB: loop body
LE: loop exit
PB: predicated region body
PF: predicated region fallthrough
CT: control target
= control target key end

     0   :  { %8 = vsyncpa [#allocation3], 0  ;;  %s272_s0 = inlined_call_operand.hbm [shape: f32[2,4,256], index: 0, kind: input, shape index: {}]   ;;  %s273_s1 = inlined_call_operand.vmem [shape: f32[4,1], index: 1, kind: input, shape index: {}]   ;;  %s274_s2 = inlined_call_operand.vmem [shape: f32[4,1], index: 2, kind: input, shape index: {}]   ;;  %s275_s3 = inlined_call_operand.hbm [shape: f32[2,4,256], index: 3, kind: output, shape index: {}]  }
   0x1   :  { %9 = vsyncpa [#allocation4], 0  ;;  %s198_s12 = smov [#allocation2]   ;;  %s150_s16 = scalar_lea.hbm %s272_s0, 256 }
   0x2   :  { %s15_s13 = sshll.u32 %s198_s12, 4  ;;  %p151_p0 = scmp.ne.s32.totalorder %s272_s0, %s150_s16  ;;  %s16_s13 = int_to_ptr.vmem [resolvable:$true] %s15_s13 }
   0x3   :  { %p154_p1 = scmp.lt.u32.totalorder %s150_s16, %s272_s0 }
   0x5   :  { %p156_p2 = pnand %p154_p1, %p151_p0 }
   0x7   :  { %159 = shalt.err (!%p156_p2)
}
   0x8   :  { %s160_s21 = scalar_lea.vmem %s16_s13, 256  ;;  %p165_p4 = scmp.lt.s32.totalorder %s16_s13, %s16_s13 }
   0x9   :  { %p161_p3 = scmp.ne.s32.totalorder %s16_s13, %s160_s21  ;;  %p166_p5 = scmp.lt.s32.totalorder %s160_s21, %s160_s21 }
   0xb   :  { %p167_p6 = por %p166_p5, %p165_p4 }
   0xd   :  { %p168_p7 = pnand %p167_p6, %p161_p3 }
   0xf   :  { %171 = shalt.err (!%p168_p7)
}
  0x10   :  { %s199_s22 = smov 128   ;;  %s200_s23 = smov 8  }
  0x11   :  { %21 = dma.hbm_to_vmem [thread:$0]  %s272_s0, 256, %s16_s13, [#allocation3], %s199_s22, %s199_s22, %s200_s23  }
  0x12   :  { %194 = dma.done.wait [#allocation3], 256  }
  0x13   :  { %195 = vsyncadd [#allocation3], 4294967040  ;;  %vm37_vm0 = vcmask 1043456   ;;  %v29_v0 = vld [vmem:[#allocation2] sm:$0xff]  ;;  %v30_v1 = vld [vmem:[#allocation2 + $0x8] sm:$0xff]  ;;  %v57_v12 = vlaneseq  ;;  %v202_v35 = vmov 0  }
  0x14   :  { %v33_v2 = vcombine.high %v29_v0, %v29_v0  ;;  %v38_v3 = vsel %vm37_vm0, %v29_v0, 0.0  ;;  %v34_v4 = vcombine.high %v30_v1, %v30_v1  ;;  %v43_v6 = vsel %vm37_vm0, %v30_v1, 0.0  ;;  %144 = vset.pattern.permute.xlu0 %v202_v35  ;;  %145 = vset.pattern.permute.xlu1 %v202_v35  ;;  %v89_v36 = vld [vmem:[%s274_s2] sm:$0xf]  ;;  %s203_s2 = smov [#allocation5]  }
  0x15   :  { %v201_v10 = vmov 839922192   ;;  %v58_v15 = vshrl.u32 %v57_v12, 7  ;;  %v88_v44 = vld [vmem:[%s273_s1] sm:$0xf]  ;;  %s126_s29 = sshll.u32 %s203_s2, 4  ;;  %s127_s29 = int_to_ptr.vmem [resolvable:$true] %s126_s29 }
  0x16   :  { %v39_v5 = vsel %vm37_vm0, %v33_v2, 0.0  ;;  %v44_v7 = vsel %vm37_vm0, %v34_v4, 0.0  ;;  %v55_v11 = vunpack.c.l.s4 %v201_v10  ;;  %s172_s30 = scalar_lea.vmem %s127_s29, 256  ;;  %p177_p9 = scmp.lt.s32.totalorder %s127_s29, %s127_s29 }
  0x17   :  { %v40_v8 = vadd.f32 %v39_v5, %v38_v3  ;;  %v45_v9 = vadd.f32 %v44_v7, %v43_v6  ;;  %p173_p8 = scmp.ne.s32.totalorder %s127_s29, %s172_s30  ;;  %p178_p10 = scmp.lt.s32.totalorder %s172_s30, %s172_s30 }
  0x18   :  { %v56_v14 = vunpack.c.0.s8 %v55_v11 }
  0x19   :  { %41 = vadd.xlane.f32.xlu0 %v40_v8  ;;  %p179_p11 = por %p178_p10, %p177_p9 }
  0x1a   :  { %v59_v19 = vsub.s32 %v56_v14, %v58_v15 }
  0x1b   :  { %p180_p12 = pnand %p179_p11, %p173_p8 }
  0x1d   :  { %46 = vadd.xlane.f32.xlu0 %v45_v9 }
  0xa6   :  { %v42_v13 = vpop.xlane.xlu0 %41 }
  0xa7   :  { %v48_v17 = vsel %vm37_vm0, %v42_v13, 0.0 }
  0xaa   :  { %v47_v16 = vpop.xlane.xlu0 %46 }
  0xab   :  { %v49_v18 = vsel %vm37_vm0, %v47_v16, 0.0 }
  0xac   :  { %v50_v20 = vadd.f32 %v49_v18, %v48_v17 }
  0xae   :  { %v52_v21 = vmul.f32 0.001953125, %v50_v20 }
  0xb0   :  { %v60_v22 = vrot.slane %v52_v21, %v59_v19 }
  0xb2   :  { %v63_v23 = vsub.f32 %v30_v1, %v60_v22  ;;  %v62_v24 = vsub.f32 %v29_v0, %v60_v22 }
  0xb4   :  { %v64_v25 = vmul.f32 %v62_v24, %v62_v24  ;;  %v65_v26 = vmul.f32 %v63_v23, %v63_v23 }
  0xb6   :  { %v68_v27 = vcombine.high %v64_v25, %v64_v25  ;;  %v69_v28 = vcombine.high %v65_v26, %v65_v26  ;;  %v72_v29 = vsel %vm37_vm0, %v64_v25, 0.0  ;;  %v77_v33 = vsel %vm37_vm0, %v65_v26, 0.0 }
  0xb8   :  { %v73_v30 = vsel %vm37_vm0, %v68_v27, 0.0  ;;  %v78_v32 = vsel %vm37_vm0, %v69_v28, 0.0 }
  0xb9   :  { %v74_v31 = vadd.f32 %v73_v30, %v72_v29  ;;  %v79_v34 = vadd.f32 %v78_v32, %v77_v33 }
  0xbb   :  { %75 = vadd.xlane.f32.xlu1 %v74_v31 }
  0xbf   :  { %80 = vadd.xlane.f32.xlu1 %v79_v34 }
  0xd0   :  { %107 = vperm.xlu1 %145, %v89_v36  }
 0x148   :  { %v76_v37 = vpop.xlane.xlu1 %75 }
 0x149   :  { %v82_v39 = vsel %vm37_vm0, %v76_v37, 0.0 }
 0x14c   :  { %v81_v38 = vpop.xlane.xlu1 %80 }
 0x14d   :  { %v83_v40 = vsel %vm37_vm0, %v81_v38, 0.0 }
 0x14e   :  { %v84_v41 = vadd.f32 %v83_v40, %v82_v39 }
 0x150   :  { %v85_v42 = vmul.f32 0.001953125, %v84_v41  ;;  %v108_v47 = vpop.permute.xlu1 %107 }
 0x151   :  { %v115_v50 = vrot.slane %v108_v47, %v59_v19 }
 0x152   :  { %v86_v43 = vadd.f32 1e-05, %v85_v42 }
 0x154   :  { %148 = vrsqrt.f32 %v86_v43 }
 0x15e   :  { %v149_v45 = vpop.eup %148 }
 0x15f   :  { %v90_v46 = vmul.f32 %v149_v45, %v88_v44 }
 0x161   :  { %93 = vperm.xlu0 %144, %v90_v46  }
 0x1e0   :  { %v94_v48 = vpop.permute.xlu0 %93 }
 0x1e1   :  { %v101_v49 = vrot.slane %v94_v48, %v59_v19 }
 0x1e3   :  { %v103_v51 = vmul.f32 %v101_v49, %v62_v24  ;;  %v104_v52 = vmul.f32 %v101_v49, %v63_v23 }
 0x1e5   :  { %v117_v53 = vadd.f32 %v115_v50, %v103_v51  ;;  %v118_v54 = vadd.f32 %v115_v50, %v104_v52 }
 0x1e7   :  { %119 = vst [vmem:[#allocation5] sm:$0xff] %v117_v53  ;;  %120 = vst [vmem:[#allocation5 + $0x8] sm:$0xff] %v118_v54 }
 0x1e8   :  { %183 = shalt.err (!%p180_p12)
}
 0x1e9   :  { %s184_s5 = scalar_lea.hbm %s275_s3, 256 }
 0x1ea   :  { %p185_p13 = scmp.ne.s32.totalorder %s275_s3, %s184_s5  ;;  %p188_p0 = scmp.lt.u32.totalorder %s184_s5, %s275_s3 }
 0x1ec   :  { %p190_p1 = pnand %p188_p0, %p185_p13 }
 0x1ee   :  { %193 = shalt.err (!%p190_p1)
}
 0x1ef   :  { %132 = dma.vmem_to_hbm [thread:$0]  %s127_s29, 256, %s275_s3, [#allocation4], %s199_s22, %s199_s22, %s200_s23  }
 0x1f0   :  { %196 = dma.done.wait [#allocation4], 256  }
 0x1f1   :  { %197 = vsyncadd [#allocation4], 4294967040 }
 0x1f2   :  { %136 = vsyncpa [#allocation3], 1 }
 0x1f3   :  { %137 = vsyncpa [#allocation4], 1 }

</bundles_post_ra>
